<compile_context>
chip_gen: v5e
topology: v5e:2x2
jax: 0.10.0
libtpu: 0.0.40
codegen_flags: <defaults>
</compile_context>

<pallas_src>
import functools

import jax
import jax.numpy as jnp
from jax.experimental import pallas as pl
from jax.experimental.pallas import tpu as pltpu

D_IN = 320
D_HID = 256
D_OUT = 128


def _round_up(n, m):
    return ((n + m - 1) // m) * m


def _discriminator_kernel(x_ref, w1_ref, b1_ref, w2_ref, b2_ref, w3_ref, b3_ref,
                          o_ref):
    # Cast x to bf16 in-kernel: saves a whole wrapper-side HBM read+write of x.
    x = x_ref[...].astype(jnp.bfloat16)
    # Layer 1: bf16 matmul on the MXU, f32 accumulate, bias + ReLU in f32.
    h = jnp.dot(x, w1_ref[...], preferred_element_type=jnp.float32) + b1_ref[...]
    h = jnp.maximum(h, 0.0).astype(jnp.bfloat16)
    # Layer 2: same pattern.
    h = jnp.dot(h, w2_ref[...], preferred_element_type=jnp.float32) + b2_ref[...]
    h = jnp.maximum(h, 0.0).astype(jnp.bfloat16)
    # Output layer (no activation).
    out = jnp.dot(h, w3_ref[...], preferred_element_type=jnp.float32) + b3_ref[...]
    o_ref[...] = out.astype(o_ref.dtype)


@functools.partial(jax.jit, static_argnames=("block_b", "out_dtype"))
def discriminator_forward(x, w1, b1, w2, b2, w3, b3, *, block_b=1024,
                          out_dtype=jnp.float32):
    """x: (B, 320) -> (B, 128) in `out_dtype` (default float32).

    Expects params already prepared by `prepare_params` (bf16 weights laid out
    (in, out); f32 biases shaped (1, D)). Matmuls run in bf16 on the MXU with
    f32 accumulation; bias adds + ReLU in f32.
    """
    B = x.shape[0]
    assert x.shape[1] == D_IN

    # Batch tile:
    #  * multiple of 16 (bf16 packs 16 rows per sublane group),
    #  * capped at ceil(B/2) so the grid has >= 2 steps for mid-size batches
    #    and the "parallel" axis shards across both TensorCores on v7x,
    #  * never larger than block_b.
    bb = min(block_b, max(16, _round_up(pl.cdiv(B, 2), 16)))
    grid = (pl.cdiv(B, bb),)  # ragged last block is masked by Pallas

    # Constant index map => Pallas does not re-issue the HBM->VMEM copy when the
    # block index is unchanged between consecutive grid steps; the whole weight
    # set stays resident in VMEM.
    resident = lambda shape: pl.BlockSpec(shape, lambda i: (0, 0))

    out = pl.pallas_call(
        _discriminator_kernel,
        out_shape=jax.ShapeDtypeStruct((B, D_OUT), out_dtype),
        grid_spec=pltpu.PrefetchScalarGridSpec(
            num_scalar_prefetch=0,
            grid=grid,
            in_specs=[
                pl.BlockSpec((bb, D_IN), lambda i: (i, 0)),  # x tile
                resident((D_IN, D_HID)),                     # w1
                resident((1, D_HID)),                        # b1
                resident((D_HID, D_HID)),                    # w2
                resident((1, D_HID)),                        # b2
                resident((D_HID, D_OUT)),                    # w3
                resident((1, D_OUT)),                        # b3
            ],
            out_specs=pl.BlockSpec((bb, D_OUT), lambda i: (i, 0)),
        ),
        compiler_params=pltpu.CompilerParams(
            dimension_semantics=("parallel",)),
    )(x, w1, b1, w2, b2, w3, b3)

    return out


def prepare_params(w1, b1, w2, b2, w3, b3):
    """One-time (outside the jitted forward) cast/reshape of params:
    bf16 weights for the MXU, f32 biases shaped (1, D) so they broadcast over
    the batch tile."""
    return (
        w1.astype(jnp.bfloat16), b1.reshape(1, D_HID).astype(jnp.float32),
        w2.astype(jnp.bfloat16), b2.reshape(1, D_HID).astype(jnp.float32),
        w3.astype(jnp.bfloat16), b3.reshape(1, D_OUT).astype(jnp.float32),
    )


def init_params(key):
    """Deterministic init mimicking PyTorch Linear default (U(-1/sqrt(fan_in), +))."""
    ks = jax.random.split(key, 6)

    def linear(kw, kb, fan_in, fan_out):
        bound = 1.0 / jnp.sqrt(fan_in)
        w = jax.random.uniform(kw, (fan_in, fan_out), jnp.float32, -bound, bound)
        b = jax.random.uniform(kb, (fan_out,), jnp.float32, -bound, bound)
        return w, b

    w1, b1 = linear(ks[0], ks[1], D_IN, D_HID)
    w2, b2 = linear(ks[2], ks[3], D_HID, D_HID)
    w3, b3 = linear(ks[4], ks[5], D_HID, D_OUT)
    return w1, b1, w2, b2, w3, b3


def reference_forward(x, w1, b1, w2, b2, w3, b3):
    h = jnp.maximum(x @ w1 + b1, 0.0)
    h = jnp.maximum(h @ w2 + b2, 0.0)
    return h @ w3 + b3


if __name__ == "__main__":
    key = jax.random.PRNGKey(0)
    kx, kp = jax.random.split(key)

    params_f32 = init_params(kp)
    params = prepare_params(*params_f32)  # one-time bf16 cast, outside the jit

    # B=12: single ragged block (not a multiple of 16).
    # B=200: multi-step parallel grid with a ragged last block.
    for batch in (12, 200):
        x = jax.random.normal(jax.random.fold_in(kx, batch), (batch, D_IN),
                              dtype=jnp.float32)
        out = jax.block_until_ready(discriminator_forward(x, *params))
        ref = reference_forward(x, *params_f32)  # f32 reference
        assert out.shape == (batch, D_OUT)
        # bf16 matmul inputs with f32 accumulation -> looser tolerance than pure f32.
        assert jnp.allclose(out, ref, atol=5e-2, rtol=5e-2), \
            f"mismatch vs JAX reference at B={batch}"

    print("KERNEL_OK")
</pallas_src>

<mosaic_0001>
module attributes {stable_mosaic.version = 11 : i64} {
  func.func @_discriminator_kernel(%arg0: i32, %arg1: memref<16x320xf32, #tpu.memory_space<vmem>>, %arg2: memref<320x256xbf16, #tpu.memory_space<vmem>>, %arg3: memref<1x256xf32, #tpu.memory_space<vmem>>, %arg4: memref<256x256xbf16, #tpu.memory_space<vmem>>, %arg5: memref<1x256xf32, #tpu.memory_space<vmem>>, %arg6: memref<256x128xbf16, #tpu.memory_space<vmem>>, %arg7: memref<1x128xf32, #tpu.memory_space<vmem>>, %arg8: memref<16x128xf32, #tpu.memory_space<vmem>>) attributes {dimension_semantics = [#tpu.dimension_semantics<parallel>], iteration_bounds = array<i64: 1>, scalar_prefetch = 0 : i64, scratch_operands = 0 : i64, tpu.core_type = #tpu.core_type<tc>, window_params = [{transform_indices = @transform_0, window_bounds = array<i64: 16, 320>}, {pipeline_mode = #tpu.pipeline_mode<synchronous>, transform_indices = @transform_1, window_bounds = array<i64: 320, 256>}, {pipeline_mode = #tpu.pipeline_mode<synchronous>, transform_indices = @transform_2, window_bounds = array<i64: 1, 256>}, {pipeline_mode = #tpu.pipeline_mode<synchronous>, transform_indices = @transform_3, window_bounds = array<i64: 256, 256>}, {pipeline_mode = #tpu.pipeline_mode<synchronous>, transform_indices = @transform_4, window_bounds = array<i64: 1, 256>}, {pipeline_mode = #tpu.pipeline_mode<synchronous>, transform_indices = @transform_5, window_bounds = array<i64: 256, 128>}, {pipeline_mode = #tpu.pipeline_mode<synchronous>, transform_indices = @transform_6, window_bounds = array<i64: 1, 128>}, {transform_indices = @transform_7, window_bounds = array<i64: 16, 128>}]} {
    %c0 = arith.constant 0 : index
    %c0_0 = arith.constant 0 : index
    %0 = vector.load %arg1[%c0, %c0_0] : memref<16x320xf32, #tpu.memory_space<vmem>>, vector<16x320xf32>
    %1 = arith.truncf %0 : vector<16x320xf32> to vector<16x320xbf16>
    %c0_1 = arith.constant 0 : index
    %c0_2 = arith.constant 0 : index
    %2 = vector.load %arg2[%c0_1, %c0_2] : memref<320x256xbf16, #tpu.memory_space<vmem>>, vector<320x256xbf16>
    %cst = arith.constant dense<0.000000e+00> : vector<16x256xf32>
    %3 = tpu.matmul %1, %2, %cst {dimension_numbers = #tpu.dot_dimension_numbers<[1], [0], [0], [1], [0, 0, 1, 1], [], []>} : vector<16x320xbf16>, vector<320x256xbf16>, vector<16x256xf32> -> vector<16x256xf32>
    %c0_3 = arith.constant 0 : index
    %c0_4 = arith.constant 0 : index
    %4 = vector.load %arg3[%c0_3, %c0_4] : memref<1x256xf32, #tpu.memory_space<vmem>>, vector<1x256xf32>
    %5 = vector.broadcast %4 : vector<1x256xf32> to vector<16x256xf32>
    %6 = arith.addf %3, %5 : vector<16x256xf32>
    %cst_5 = arith.constant 0.000000e+00 : f32
    %7 = vector.broadcast %cst_5 : f32 to vector<16x256xf32>
    %8 = arith.maximumf %6, %7 : vector<16x256xf32>
    %9 = arith.truncf %8 : vector<16x256xf32> to vector<16x256xbf16>
    %c0_6 = arith.constant 0 : index
    %c0_7 = arith.constant 0 : index
    %10 = vector.load %arg4[%c0_6, %c0_7] : memref<256x256xbf16, #tpu.memory_space<vmem>>, vector<256x256xbf16>
    %cst_8 = arith.constant dense<0.000000e+00> : vector<16x256xf32>
    %11 = tpu.matmul %9, %10, %cst_8 {dimension_numbers = #tpu.dot_dimension_numbers<[1], [0], [0], [1], [0, 0, 1, 1], [], []>} : vector<16x256xbf16>, vector<256x256xbf16>, vector<16x256xf32> -> vector<16x256xf32>
    %c0_9 = arith.constant 0 : index
    %c0_10 = arith.constant 0 : index
    %12 = vector.load %arg5[%c0_9, %c0_10] : memref<1x256xf32, #tpu.memory_space<vmem>>, vector<1x256xf32>
    %13 = vector.broadcast %12 : vector<1x256xf32> to vector<16x256xf32>
    %14 = arith.addf %11, %13 : vector<16x256xf32>
    %cst_11 = arith.constant 0.000000e+00 : f32
    %15 = vector.broadcast %cst_11 : f32 to vector<16x256xf32>
    %16 = arith.maximumf %14, %15 : vector<16x256xf32>
    %17 = arith.truncf %16 : vector<16x256xf32> to vector<16x256xbf16>
    %c0_12 = arith.constant 0 : index
    %c0_13 = arith.constant 0 : index
    %18 = vector.load %arg6[%c0_12, %c0_13] : memref<256x128xbf16, #tpu.memory_space<vmem>>, vector<256x128xbf16>
    %cst_14 = arith.constant dense<0.000000e+00> : vector<16x128xf32>
    %19 = tpu.matmul %17, %18, %cst_14 {dimension_numbers = #tpu.dot_dimension_numbers<[1], [0], [0], [1], [0, 0, 1, 1], [], []>} : vector<16x256xbf16>, vector<256x128xbf16>, vector<16x128xf32> -> vector<16x128xf32>
    %c0_15 = arith.constant 0 : index
    %c0_16 = arith.constant 0 : index
    %20 = vector.load %arg7[%c0_15, %c0_16] : memref<1x128xf32, #tpu.memory_space<vmem>>, vector<1x128xf32>
    %21 = vector.broadcast %20 : vector<1x128xf32> to vector<16x128xf32>
    %22 = arith.addf %19, %21 : vector<16x128xf32>
    %c0_17 = arith.constant 0 : index
    %c0_18 = arith.constant 0 : index
    %23 = vector.load %arg8[%c0_17, %c0_18] : memref<16x128xf32, #tpu.memory_space<vmem>>, vector<16x128xf32>
    tpu.vector_store %arg8[%c0_17, %c0_18], %22 {strides = array<i32>} : memref<16x128xf32, #tpu.memory_space<vmem>>, vector<16x128xf32>,
    return
  }
  func.func @transform_0(%arg0: i32) -> (i32, i32) {
    %c0_i32 = arith.constant 0 : i32
    %c0_i32_0 = arith.constant 0 : i32
    return %arg0, %c0_i32 : i32, i32
  }
  func.func @transform_1(%arg0: i32) -> (i32, i32) {
    %c0_i32 = arith.constant 0 : i32
    %c0_i32_0 = arith.constant 0 : i32
    %c0_i32_1 = arith.constant 0 : i32
    return %c0_i32, %c0_i32_0 : i32, i32
  }
  func.func @transform_2(%arg0: i32) -> (i32, i32) {
    %c0_i32 = arith.constant 0 : i32
    %c0_i32_0 = arith.constant 0 : i32
    %c0_i32_1 = arith.constant 0 : i32
    return %c0_i32, %c0_i32_0 : i32, i32
  }
  func.func @transform_3(%arg0: i32) -> (i32, i32) {
    %c0_i32 = arith.constant 0 : i32
    %c0_i32_0 = arith.constant 0 : i32
    %c0_i32_1 = arith.constant 0 : i32
    return %c0_i32, %c0_i32_0 : i32, i32
  }
  func.func @transform_4(%arg0: i32) -> (i32, i32) {
    %c0_i32 = arith.constant 0 : i32
    %c0_i32_0 = arith.constant 0 : i32
    %c0_i32_1 = arith.constant 0 : i32
    return %c0_i32, %c0_i32_0 : i32, i32
  }
  func.func @transform_5(%arg0: i32) -> (i32, i32) {
    %c0_i32 = arith.constant 0 : i32
    %c0_i32_0 = arith.constant 0 : i32
    %c0_i32_1 = arith.constant 0 : i32
    return %c0_i32, %c0_i32_0 : i32, i32
  }
  func.func @transform_6(%arg0: i32) -> (i32, i32) {
    %c0_i32 = arith.constant 0 : i32
    %c0_i32_0 = arith.constant 0 : i32
    %c0_i32_1 = arith.constant 0 : i32
    return %c0_i32, %c0_i32_0 : i32, i32
  }
  func.func @transform_7(%arg0: i32) -> (i32, i32) {
    %c0_i32 = arith.constant 0 : i32
    %c0_i32_0 = arith.constant 0 : i32
    return %arg0, %c0_i32 : i32, i32
  }
}

</mosaic_0001>

<bundles_post_ra>
// kernel: discriminator_forward.1
= control target key start
LH: loop header
LB: loop body
LE: loop exit
PB: predicated region body
PF: predicated region fallthrough
CT: control target
= control target key end

     0   :  { %12 = vsyncpa [#allocation3], 0  ;;  %s1594_s0 = inlined_call_operand.hbm [shape: f32[12,320], index: 0, kind: input, shape index: {}]   ;;  %s1595_s1 = inlined_call_operand.hbm [shape: bf16[320,256], index: 1, kind: input, shape index: {}]   ;;  %s1596_s2 = inlined_call_operand.hbm [shape: f32[1,256], index: 2, kind: input, shape index: {}]   ;;  %s1597_s3 = inlined_call_operand.hbm [shape: bf16[256,256], index: 3, kind: input, shape index: {}]   ;;  %s1598_s4 = inlined_call_operand.vmem [shape: f32[1,256], index: 4, kind: input, shape index: {}]   ;;  %s1599_s5 = inlined_call_operand.hbm [shape: bf16[256,128], index: 5, kind: input, shape index: {}]   ;;  %s1600_s6 = inlined_call_operand.vmem [shape: f32[1,128], index: 6, kind: input, shape index: {}]   ;;  %s1601_s7 = inlined_call_operand.hbm [shape: f32[12,128], index: 7, kind: output, shape index: {}]  }
   0x1   :  { %13 = vsyncpa [#allocation6], 0 }
   0x2   :  { %14 = vsyncpa [#allocation9], 0  ;;  %s33_s26 = sshll.u32 %s1595_s1, 4  ;;  %s34_s26 = int_to_ptr.hbm [resolvable:$true] %s33_s26 }
   0x3   :  { %15 = vsyncpa [#allocation4], 0  ;;  %s1503_s27 = smov [#allocation5]   ;;  %s57_s8 = sshll.u32 %s1597_s3, 4  ;;  %s58_s8 = int_to_ptr.hbm [resolvable:$true] %s57_s8 }
   0x4   :  { %s35_s28 = sshll.u32 %s1503_s27, 4  ;;  %s1504_s9 = smov 128   ;;  %s36_s28 = int_to_ptr.vmem [resolvable:$true] %s35_s28 }
   0x5   :  { %s1505_s10 = smov 8   ;;  %s1506_s11 = smov [#allocation8]  }
   0x6   :  { %41 = dma.hbm_to_vmem [thread:$0]  %s34_s26, 5120, %s36_s28, [#allocation6], %s1504_s9, %s1504_s9, %s1505_s10  }
   0x7   :  { %s59_s12 = sshll.u32 %s1506_s11, 4  ;;  %s20_s14 = sshll.u32 %s1594_s0, 4  ;;  %s60_s12 = int_to_ptr.vmem [resolvable:$true] %s59_s12  ;;  %s21_s14 = int_to_ptr.hbm [resolvable:$true] %s20_s14 }
   0x8   :  { %65 = dma.hbm_to_vmem [thread:$0]  %s58_s8, 4096, %s60_s12, [#allocation9], %s1504_s9, %s1504_s9, %s1505_s10  }
   0x9   :  { %s1507_s3 = smov [#allocation2]   ;;  %s47_s18 = sshll.u32 %s1596_s2, 4  ;;  %s48_s18 = int_to_ptr.hbm [resolvable:$true] %s47_s18 }
   0xa   :  { %s22_s15 = sshll.u32 %s1507_s3, 4  ;;  %s1508_s19 = smov 384   ;;  %s23_s15 = int_to_ptr.vmem [resolvable:$true] %s22_s15 }
   0xb   :  { %s1509_s20 = smov 24   ;;  %s1510_s21 = smov [#allocation7]  }
   0xc   :  { %28 = dma.hbm_to_vmem [thread:$0]  %s21_s14, 768, %s23_s15, [#allocation3], %s1508_s19, %s1508_s19, %s1509_s20  }
   0xd   :  { %s49_s22 = sshll.u32 %s1510_s21, 4  ;;  %s72_s24 = sshll.u32 %s1599_s5, 4  ;;  %s50_s22 = int_to_ptr.vmem [resolvable:$true] %s49_s22  ;;  %s73_s24 = int_to_ptr.hbm [resolvable:$true] %s72_s24 }
   0xe   :  { %52 = dma.hbm_to_vmem [thread:$0]  %s48_s18, 32, %s50_s22, [#allocation6]  }
   0xf   :  { %s1511_s25 = smov [#allocation10]   ;;  %s1512_s27 = smov 64  }
  0x10   :  { %s74_s26 = sshll.u32 %s1511_s25, 4  ;;  %s1513_s28 = smov 4   ;;  %s75_s26 = int_to_ptr.vmem [resolvable:$true] %s74_s26 }
  0x11   :  { %80 = dma.hbm_to_vmem [thread:$0]  %s73_s24, 2048, %s75_s26, [#allocation9], %s1512_s27, %s1512_s27, %s1513_s28  }
  0x12   :  { %1495 = dma.done.wait [#allocation3], 768  }
  0x13   :  { %1496 = vsyncadd [#allocation3], 4294966528 }
  0x14   :  { %1497 = dma.done.wait [#allocation6], 5152  }
  0x15   :  { %1498 = vsyncadd [#allocation6], 4294962144 }
  0x16   :  { %1499 = dma.done.wait [#allocation9], 6144  }
  0x17   :  { %1500 = vsyncadd [#allocation9], 4294961152  ;;  %v954_v0 = vld [vmem:[#allocation5 + $0x70] sm:$0xf]  ;;  %v1265_v1 = vld [vmem:[#allocation5 + $0x74] sm:$0xf0] }
  0x18   :  { %v1050_v2 = vld [vmem:[#allocation5 + $0x130] sm:$0xf]  ;;  %v955_v3 = vor.u32 %v1265_v1, %v954_v0  ;;  %v1289_v4 = vld [vmem:[#allocation5 + $0x134] sm:$0xf0]  ;;  %v1264_v9 = vld [vmem:[#allocation5 + $0x74] sm:$0xf] }
  0x19   :  { %v1018_v5 = vld [vmem:[#allocation5 + $0xf0] sm:$0xf]  ;;  %v1281_v6 = vld [vmem:[#allocation5 + $0xf4] sm:$0xf0]  ;;  %v1051_v7 = vor.u32 %v1289_v4, %v1050_v2  ;;  %v956_v10 = vld [vmem:[#allocation5 + $0x78] sm:$0xf0] }
  0x1a   :  { %v1019_v8 = vor.u32 %v1281_v6, %v1018_v5  ;;  %v946_v11 = vld [vmem:[#allocation5 + $0x60] sm:$0xf]  ;;  %363 = vmatpush.bf16.msra.mxu0 %v955_v3  ;;  %v959_v12 = vor.u32 %v1264_v9, %v956_v10  ;;  %v1263_v13 = vld [vmem:[#allocation5 + $0x64] sm:$0xf0]  ;;  %v1262_v20 = vld [vmem:[#allocation5 + $0x64] sm:$0xf] }
  0x1b   :  { %v1042_v14 = vld [vmem:[#allocation5 + $0x120] sm:$0xf]  ;;  %v1287_v15 = vld [vmem:[#allocation5 + $0x124] sm:$0xf0]  ;;  %395 = vmatpush.bf16.msra.mxu2 %v1051_v7  ;;  %v947_v16 = vor.u32 %v1263_v13, %v946_v11  ;;  %v948_v22 = vld [vmem:[#allocation5 + $0x68] sm:$0xf0] }
  0x1c   :  { %377 = vmatpush.bf16.msra.mxu1 %v1019_v8  ;;  %v1043_v17 = vor.u32 %v1287_v15, %v1042_v14  ;;  %v1010_v18 = vld [vmem:[#allocation5 + $0xe0] sm:$0xf]  ;;  %v1279_v19 = vld [vmem:[#allocation5 + $0xe4] sm:$0xf0]  ;;  %405 = vmatpush.bf16.msra.mxu3 %v959_v12  ;;  %v938_v23 = vld [vmem:[#allocation5 + $0x50] sm:$0xf]  ;;  %v951_v25 = vor.u32 %v1262_v20, %v948_v22 }
  0x1d   :  { %v1011_v21 = vor.u32 %v1279_v19, %v1010_v18  ;;  %v1261_v24 = vld [vmem:[#allocation5 + $0x54] sm:$0xf0]  ;;  %v1034_v26 = vld [vmem:[#allocation5 + $0x110] sm:$0xf]  ;;  %v1260_v31 = vld [vmem:[#allocation5 + $0x54] sm:$0xf] }
  0x1e   :  { %v1285_v27 = vld [vmem:[#allocation5 + $0x114] sm:$0xf0]  ;;  %v1002_v28 = vld [vmem:[#allocation5 + $0xd0] sm:$0xf]  ;;  %364 = vmatpush.bf16.msra.mxu0 %v947_v16  ;;  %v939_v29 = vor.u32 %v1261_v24, %v938_v23  ;;  %v940_v32 = vld [vmem:[#allocation5 + $0x58] sm:$0xf0] }
  0x1f   :  { %v1277_v30 = vld [vmem:[#allocation5 + $0xd4] sm:$0xf0]  ;;  %396 = vmatpush.bf16.msra.mxu2 %v1043_v17  ;;  %v1035_v33 = vor.u32 %v1285_v27, %v1034_v26  ;;  %v930_v35 = vld [vmem:[#allocation5 + $0x40] sm:$0xf]  ;;  %v1259_v36 = vld [vmem:[#allocation5 + $0x44] sm:$0xf0]  ;;  %v943_v38 = vor.u32 %v1260_v31, %v940_v32 }
  0x20   :  { %378 = vmatpush.bf16.msra.mxu1 %v1011_v21  ;;  %v1003_v34 = vor.u32 %v1277_v30, %v1002_v28  ;;  %v1026_v37 = vld [vmem:[#allocation5 + $0x100] sm:$0xf]  ;;  %406 = vmatpush.bf16.msra.mxu3 %v951_v25  ;;  %v1283_v39 = vld [vmem:[#allocation5 + $0x104] sm:$0xf0]  ;;  %v1280_v40 = vld [vmem:[#allocation5 + $0xf4] sm:$0xf]  ;;  %v931_v45 = vor.u32 %v1259_v36, %v930_v35 }
  0x21   :  { %v1020_v41 = vld [vmem:[#allocation5 + $0xf8] sm:$0xf0]  ;;  %v994_v42 = vld [vmem:[#allocation5 + $0xc0] sm:$0xf]  ;;  %v1275_v43 = vld [vmem:[#allocation5 + $0xc4] sm:$0xf0]  ;;  %v1027_v47 = vor.u32 %v1283_v39, %v1026_v37 }
  0x22   :  { %v1258_v44 = vld [vmem:[#allocation5 + $0x44] sm:$0xf]  ;;  %365 = vmatpush.bf16.msra.mxu0 %v939_v29  ;;  %v932_v46 = vld [vmem:[#allocation5 + $0x48] sm:$0xf0]  ;;  %v995_v48 = vor.u32 %v1275_v43, %v994_v42  ;;  %v922_v49 = vld [vmem:[#allocation5 + $0x30] sm:$0xf]  ;;  %v1023_v52 = vor.u32 %v1280_v40, %v1020_v41 }
  0x23   :  { %397 = vmatpush.bf16.msra.mxu2 %v1035_v33  ;;  %v1257_v50 = vld [vmem:[#allocation5 + $0x34] sm:$0xf0]  ;;  %v1278_v51 = vld [vmem:[#allocation5 + $0xe4] sm:$0xf]  ;;  %v935_v53 = vor.u32 %v1258_v44, %v932_v46  ;;  %v1012_v54 = vld [vmem:[#allocation5 + $0xe8] sm:$0xf0] }
  0x24   :  { %379 = vmatpush.bf16.msra.mxu1 %v1003_v34  ;;  %407 = vmatpush.bf16.msra.mxu3 %v943_v38  ;;  %v986_v55 = vld [vmem:[#allocation5 + $0xb0] sm:$0xf]  ;;  %v1273_v56 = vld [vmem:[#allocation5 + $0xb4] sm:$0xf0]  ;;  %v1256_v57 = vld [vmem:[#allocation5 + $0x34] sm:$0xf]  ;;  %v923_v60 = vor.u32 %v1257_v50, %v922_v49  ;;  %v1015_v2 = vor.u32 %v1278_v51, %v1012_v54 }
  0x25   :  { %v924_v58 = vld [vmem:[#allocation5 + $0x38] sm:$0xf0]  ;;  %v106_v59 = vld [vmem:[#allocation2 + $0x10] sm:$0xff]  ;;  %v987_v62 = vor.u32 %v1273_v56, %v986_v55  ;;  %v1255_v0 = vld [vmem:[#allocation5 + $0x24] sm:$0xf0]  ;;  %vm359_vm0 = vcmask 523264  }
  0x26   :  { %366 = vmatpush.bf16.msra.mxu0 %v931_v45  ;;  %v109_v61 = vld [vmem:[#allocation2 + $0x28] sm:$0xff]  ;;  %v914_v63 = vld [vmem:[#allocation5 + $0x20] sm:$0xf]  ;;  %v927_v3 = vor.u32 %v1256_v57, %v924_v58  ;;  %v1276_v4 = vld [vmem:[#allocation5 + $0xd4] sm:$0xf]  ;;  %s1514_s30 = smov [#allocation11]  }
  0x27   :  { %398 = vmatpush.bf16.msra.mxu2 %v1027_v47  ;;  %v1576_v1 = vpack.c.bf16 %v109_v61, %v106_v59  ;;  %v978_v5 = vld [vmem:[#allocation5 + $0xa0] sm:$0xf]  ;;  %v1271_v6 = vld [vmem:[#allocation5 + $0xa4] sm:$0xf0]  ;;  %v1004_v7 = vld [vmem:[#allocation5 + $0xd8] sm:$0xf0]  ;;  %v915_v10 = vor.u32 %v1255_v0, %v914_v63 }
  0x28   :  { %380 = vmatpush.bf16.msra.mxu1 %v995_v48  ;;  %408 = vmatpush.bf16.msra.mxu3 %v935_v53  ;;  %v1254_v8 = vld [vmem:[#allocation5 + $0x24] sm:$0xf]  ;;  %v916_v9 = vld [vmem:[#allocation5 + $0x28] sm:$0xf0]  ;;  %v979_v11 = vor.u32 %v1271_v6, %v978_v5  ;;  %v906_v12 = vld [vmem:[#allocation5 + $0x10] sm:$0xf]  ;;  %v1007_v14 = vor.u32 %v1276_v4, %v1004_v7 }
  0x29   :  { %v1253_v13 = vld [vmem:[#allocation5 + $0x14] sm:$0xf0]  ;;  %v919_v15 = vor.u32 %v1254_v8, %v916_v9  ;;  %v1274_v16 = vld [vmem:[#allocation5 + $0xc4] sm:$0xf]  ;;  %v970_v17 = vld [vmem:[#allocation5 + $0x90] sm:$0xf] }
  0x2a   :  { %367 = vmatpush.bf16.msra.mxu0 %v923_v60  ;;  %1056 = vmatmul.msk.bf16.vlgmr.msra.gmra.mxu2 %vm359_vm0, %v1576_v1  ;;  %v1269_v18 = vld [vmem:[#allocation5 + $0x94] sm:$0xf0]  ;;  %v996_v19 = vld [vmem:[#allocation5 + $0xc8] sm:$0xf0]  ;;  %v1252_v20 = vld [vmem:[#allocation5 + $0x14] sm:$0xf]  ;;  %v907_v22 = vor.u32 %v1253_v13, %v906_v12 }
  0x2b   :  { %419 = vmatpush.bf16.msrb.mxu2 %v1023_v52  ;;  %v908_v21 = vld [vmem:[#allocation5 + $0x18] sm:$0xf0]  ;;  %v898_v23 = vld [vmem:[#allocation5] sm:$0xf]  ;;  %v971_v24 = vor.u32 %v1269_v18, %v970_v17  ;;  %v1251_v25 = vld [vmem:[#allocation5 + $0x4] sm:$0xf0]  ;;  %v999_v28 = vor.u32 %v1274_v16, %v996_v19 }
  0x2c   :  { %381 = vmatpush.bf16.msra.mxu1 %v987_v62  ;;  %409 = vmatpush.bf16.msra.mxu3 %v927_v3  ;;  %v1272_v26 = vld [vmem:[#allocation5 + $0xb4] sm:$0xf]  ;;  %v962_v27 = vld [vmem:[#allocation5 + $0x80] sm:$0xf]  ;;  %v911_v29 = vor.u32 %v1252_v20, %v908_v21  ;;  %v1267_v30 = vld [vmem:[#allocation5 + $0x84] sm:$0xf0]  ;;  %v899_v36 = vor.u32 %v1251_v25, %v898_v23 }
  0x2d   :  { %v1288_v31 = vld [vmem:[#allocation5 + $0x134] sm:$0xf]  ;;  %v1052_v32 = vld [vmem:[#allocation5 + $0x138] sm:$0xf0]  ;;  %v1250_v34 = vld [vmem:[#allocation5 + $0x4] sm:$0xf]  ;;  %v963_v39 = vor.u32 %v1267_v30, %v962_v27 }
  0x2e   :  { %368 = vmatpush.bf16.msra.mxu0 %v915_v10  ;;  %v988_v33 = vld [vmem:[#allocation5 + $0xb8] sm:$0xf0]  ;;  %v900_v35 = vld [vmem:[#allocation5 + $0x8] sm:$0xf0]  ;;  %v104_v37 = vld [vmem:[#allocation2] sm:$0xff]  ;;  %v1055_v40 = vor.u32 %v1288_v31, %v1052_v32  ;;  %s879_s8 = sshll.u32 %s1514_s30, 4  ;;  %s880_s8 = int_to_ptr.vmem [resolvable:$true] %s879_s8 }
  0x2f   :  { %420 = vmatpush.bf16.msrb.mxu2 %v1015_v2  ;;  %v107_v38 = vld [vmem:[#allocation2 + $0x18] sm:$0xff]  ;;  %v105_v41 = vld [vmem:[#allocation2 + $0x8] sm:$0xff]  ;;  %v108_v42 = vld [vmem:[#allocation2 + $0x20] sm:$0xff]  ;;  %v991_v44 = vor.u32 %v1272_v26, %v988_v33  ;;  %v903_v45 = vor.u32 %v1250_v34, %v900_v35  ;;  %s881_s13 = sshll.u32 %s1601_s7, 4  ;;  %s882_s13 = int_to_ptr.hbm [resolvable:$true] %s881_s13 }
  0x30   :  { %382 = vmatpush.bf16.msra.mxu1 %v979_v11  ;;  %410 = vmatpush.bf16.msra.mxu3 %v919_v15  ;;  %v1116_v43 = vld [vmem:[#allocation8 + $0x70] sm:$0xf]  ;;  %v1286_v46 = vld [vmem:[#allocation5 + $0x124] sm:$0xf]  ;;  %v1044_v47 = vld [vmem:[#allocation5 + $0x128] sm:$0xf0]  ;;  %v110_v49 = vpack.c.bf16 %v107_v38, %v104_v37  ;;  %v111_v53 = vpack.c.bf16 %v108_v42, %v105_v41 }
  0x31   :  { %v1305_v48 = vld [vmem:[#allocation8 + $0x74] sm:$0xf0]  ;;  %v1270_v50 = vld [vmem:[#allocation5 + $0xa4] sm:$0xf]  ;;  %v980_v51 = vld [vmem:[#allocation5 + $0xa8] sm:$0xf0]  ;;  %v1047_v56 = vor.u32 %v1286_v46, %v1044_v47 }
  0x32   :  { %369 = vmatpush.bf16.msra.mxu0 %v907_v22  ;;  %v1117_v52 = vor.u32 %v1305_v48, %v1116_v43  ;;  %v1108_v54 = vld [vmem:[#allocation8 + $0x60] sm:$0xf]  ;;  %v1303_v55 = vld [vmem:[#allocation8 + $0x64] sm:$0xf0]  ;;  %v983_v57 = vor.u32 %v1270_v50, %v980_v51  ;;  %v1284_v58 = vld [vmem:[#allocation5 + $0x114] sm:$0xf] }
  0x33   :  { %421 = vmatpush.bf16.msrb.mxu2 %v1007_v14  ;;  %v1036_v59 = vld [vmem:[#allocation5 + $0x118] sm:$0xf0]  ;;  %v1268_v60 = vld [vmem:[#allocation5 + $0x94] sm:$0xf]  ;;  %v1109_v62 = vor.u32 %v1303_v55, %v1108_v54  ;;  %v1266_v2 = vld [vmem:[#allocation5 + $0x84] sm:$0xf] }
  0x34   :  { %383 = vmatpush.bf16.msra.mxu1 %v971_v24  ;;  %411 = vmatpush.bf16.msra.mxu3 %v911_v29  ;;  %v972_v61 = vld [vmem:[#allocation5 + $0x98] sm:$0xf0]  ;;  %v1039_v63 = vor.u32 %v1284_v58, %v1036_v59  ;;  %v1282_v3 = vld [vmem:[#allocation5 + $0x104] sm:$0xf]  ;;  %v1028_v4 = vld [vmem:[#allocation5 + $0x108] sm:$0xf0] }
  0x35   :  { %v975_v0 = vor.u32 %v1268_v60, %v972_v61  ;;  %v964_v5 = vld [vmem:[#allocation5 + $0x88] sm:$0xf0]  ;;  %v1304_v6 = vld [vmem:[#allocation8 + $0x74] sm:$0xf]  ;;  %v1118_v7 = vld [vmem:[#allocation8 + $0x78] sm:$0xf0]  ;;  %v1031_v8 = vor.u32 %v1282_v3, %v1028_v4 }
  0x36   :  { %370 = vmatpush.bf16.msra.mxu0 %v899_v36  ;;  %v967_v9 = vor.u32 %v1266_v2, %v964_v5  ;;  %v1121_v10 = vor.u32 %v1304_v6, %v1118_v7  ;;  %v1302_v11 = vld [vmem:[#allocation8 + $0x64] sm:$0xf]  ;;  %v1110_v12 = vld [vmem:[#allocation8 + $0x68] sm:$0xf0]  ;;  %v1100_v14 = vld [vmem:[#allocation8 + $0x50] sm:$0xf] }
  0x37   :  { %422 = vmatpush.bf16.msrb.mxu2 %v999_v28  ;;  %v1113_v13 = vor.u32 %v1302_v11, %v1110_v12  ;;  %v1301_v15 = vld [vmem:[#allocation8 + $0x54] sm:$0xf0]  ;;  %v1300_v16 = vld [vmem:[#allocation8 + $0x54] sm:$0xf]  ;;  %v1102_v18 = vld [vmem:[#allocation8 + $0x58] sm:$0xf0] }
  0x38   :  { %384 = vmatpush.bf16.msra.mxu1 %v963_v39  ;;  %412 = vmatpush.bf16.msra.mxu3 %v903_v45  ;;  %v1101_v17 = vor.u32 %v1301_v15, %v1100_v14  ;;  %v1105_v19 = vor.u32 %v1300_v16, %v1102_v18  ;;  %v1092_v20 = vld [vmem:[#allocation8 + $0x40] sm:$0xf]  ;;  %v1299_v21 = vld [vmem:[#allocation8 + $0x44] sm:$0xf0]  ;;  %v1298_v22 = vld [vmem:[#allocation8 + $0x44] sm:$0xf] }
  0x39   :  { %371 = vmatmul.bf16.vlgmr.msra.gmra.mxu0 %v110_v49  ;;  %v1093_v23 = vor.u32 %v1299_v21, %v1092_v20  ;;  %v1094_v24 = vld [vmem:[#allocation8 + $0x48] sm:$0xf0]  ;;  %v1084_v26 = vld [vmem:[#allocation8 + $0x30] sm:$0xf]  ;;  %v1297_v27 = vld [vmem:[#allocation8 + $0x34] sm:$0xf0] }
  0x3a   :  { %437 = vmatpush.bf16.msrb.mxu0 %v1055_v40  ;;  %v1097_v25 = vor.u32 %v1298_v22, %v1094_v24  ;;  %v1296_v28 = vld [vmem:[#allocation8 + $0x34] sm:$0xf]  ;;  %v1086_v29 = vld [vmem:[#allocation8 + $0x38] sm:$0xf0]  ;;  %v1180_v30 = vld [vmem:[#allocation8 + $0xf0] sm:$0xf] }
  0x3b   :  { %423 = vmatpush.bf16.msrb.mxu2 %v991_v44  ;;  %385 = vmatmul.bf16.vlgmr.msra.gmra.mxu1 %v111_v53  ;;  %v1321_v31 = vld [vmem:[#allocation8 + $0xf4] sm:$0xf0]  ;;  %v1089_v32 = vor.u32 %v1296_v28, %v1086_v29  ;;  %v1320_v34 = vld [vmem:[#allocation8 + $0xf4] sm:$0xf]  ;;  %v1182_v35 = vld [vmem:[#allocation8 + $0xf8] sm:$0xf0] }
  0x3c   :  { %651 = vmatpush.bf16.msrb.mxu1 %v1117_v52  ;;  %413 = vmatmul.bf16.vlgmr.msra.gmra.mxu3 %v110_v49  ;;  %v1181_v33 = vor.u32 %v1321_v31, %v1180_v30  ;;  %v1185_v36 = vor.u32 %v1320_v34, %v1182_v35  ;;  %v1076_v37 = vld [vmem:[#allocation8 + $0x20] sm:$0xf]  ;;  %v1295_v38 = vld [vmem:[#allocation8 + $0x24] sm:$0xf0]  ;;  %v1294_v39 = vld [vmem:[#allocation8 + $0x24] sm:$0xf] }
  0x3d   :  { %v1077_v40 = vor.u32 %v1295_v38, %v1076_v37  ;;  %v1078_v41 = vld [vmem:[#allocation8 + $0x28] sm:$0xf0]  ;;  %v1172_v42 = vld [vmem:[#allocation8 + $0xe0] sm:$0xf]  ;;  %v1319_v43 = vld [vmem:[#allocation8 + $0xe4] sm:$0xf0] }
  0x3e   :  { %438 = vmatpush.bf16.msrb.mxu0 %v1047_v56  ;;  %665 = vmatpush.bf16.msrb.mxu3 %v1181_v33  ;;  %v1081_v44 = vor.u32 %v1294_v39, %v1078_v41  ;;  %v1173_v45 = vor.u32 %v1319_v43, %v1172_v42  ;;  %v1318_v46 = vld [vmem:[#allocation8 + $0xe4] sm:$0xf]  ;;  %v1174_v47 = vld [vmem:[#allocation8 + $0xe8] sm:$0xf0]  ;;  %v1068_v49 = vld [vmem:[#allocation8 + $0x10] sm:$0xf] }
  0x3f   :  { %424 = vmatpush.bf16.msrb.mxu2 %v983_v57  ;;  %v1177_v48 = vor.u32 %v1318_v46, %v1174_v47  ;;  %v1293_v50 = vld [vmem:[#allocation8 + $0x14] sm:$0xf0]  ;;  %v1292_v51 = vld [vmem:[#allocation8 + $0x14] sm:$0xf]  ;;  %v1164_v54 = vld [vmem:[#allocation8 + $0xd0] sm:$0xf] }
  0x40   :  { %652 = vmatpush.bf16.msrb.mxu1 %v1109_v62  ;;  %v1069_v52 = vor.u32 %v1293_v50, %v1068_v49  ;;  %v1317_v55 = vld [vmem:[#allocation8 + $0xd4] sm:$0xf0]  ;;  %v1316_v58 = vld [vmem:[#allocation8 + $0xd4] sm:$0xf]  ;;  %v1166_v59 = vld [vmem:[#allocation8 + $0xd8] sm:$0xf0] }
  0x41   :  { %v1165_v57 = vor.u32 %v1317_v55, %v1164_v54  ;;  %v1169_v60 = vor.u32 %v1316_v58, %v1166_v59  ;;  %v1060_v61 = vld [vmem:[#allocation8] sm:$0xf]  ;;  %v1291_v62 = vld [vmem:[#allocation8 + $0x4] sm:$0xf0]  ;;  %v1062_v2 = vld [vmem:[#allocation8 + $0x8] sm:$0xf0] }
  0x42   :  { %439 = vmatpush.bf16.msrb.mxu0 %v1039_v63  ;;  %666 = vmatpush.bf16.msrb.mxu3 %v1173_v45  ;;  %v1290_v63 = vld [vmem:[#allocation8 + $0x4] sm:$0xf]  ;;  %v1156_v3 = vld [vmem:[#allocation8 + $0xc0] sm:$0xf]  ;;  %v1315_v4 = vld [vmem:[#allocation8 + $0xc4] sm:$0xf0] }
  0x43   :  { %425 = vmatpush.bf16.msrb.mxu2 %v975_v0  ;;  %v1061_v0 = vor.u32 %v1291_v62, %v1060_v61  ;;  %v1065_v5 = vor.u32 %v1290_v63, %v1062_v2  ;;  %v1157_v6 = vor.u32 %v1315_v4, %v1156_v3  ;;  %v1314_v7 = vld [vmem:[#allocation8 + $0xc4] sm:$0xf]  ;;  %v1313_v11 = vld [vmem:[#allocation8 + $0xb4] sm:$0xf0]  ;;  %v1312_v12 = vld [vmem:[#allocation8 + $0xb4] sm:$0xf] }
  0x44   :  { %653 = vmatpush.bf16.msrb.mxu1 %v1101_v17  ;;  %v1150_v14 = vld [vmem:[#allocation8 + $0xb8] sm:$0xf0]  ;;  %v1140_v16 = vld [vmem:[#allocation8 + $0xa0] sm:$0xf]  ;;  %v1311_v17 = vld [vmem:[#allocation8 + $0xa4] sm:$0xf0] }
  0x45   :  { %v1153_v15 = vor.u32 %v1312_v12, %v1150_v14  ;;  %v1310_v18 = vld [vmem:[#allocation8 + $0xa4] sm:$0xf]  ;;  %v1142_v20 = vld [vmem:[#allocation8 + $0xa8] sm:$0xf0]  ;;  %v153_v22 = vld [vmem:[#allocation7] sm:$0x3] }
  0x46   :  { %440 = vmatpush.bf16.msrb.mxu0 %v1031_v8  ;;  %667 = vmatpush.bf16.msrb.mxu3 %v1165_v57  ;;  %v1158_v8 = vld [vmem:[#allocation8 + $0xc8] sm:$0xf0]  ;;  %v1145_v21 = vor.u32 %v1310_v18, %v1142_v20  ;;  %v1309_v24 = vld [vmem:[#allocation8 + $0x94] sm:$0xf0]  ;;  %v1124_v29 = vld [vmem:[#allocation8 + $0x80] sm:$0xf] }
  0x47   :  { %426 = vmatpush.bf16.msrb.mxu2 %v967_v9  ;;  %v1161_v9 = vor.u32 %v1314_v7, %v1158_v8  ;;  %v1307_v30 = vld [vmem:[#allocation8 + $0x84] sm:$0xf0]  ;;  %v1306_v31 = vld [vmem:[#allocation8 + $0x84] sm:$0xf]  ;;  %v1126_v34 = vld [vmem:[#allocation8 + $0x88] sm:$0xf0] }
  0x48   :  { %654 = vmatpush.bf16.msrb.mxu1 %v1093_v23  ;;  %v1132_v23 = vld [vmem:[#allocation8 + $0x90] sm:$0xf]  ;;  %v1125_v33 = vor.u32 %v1307_v30, %v1124_v29  ;;  %v156_v50 = vperm.slane %v153_v22, 1  ;;  %v1329_v3 = vld [vmem:[#allocation10 + $0x38] sm:$0xff]  ;;  %v1327_v7 = vld [vmem:[#allocation10 + $0x28] sm:$0xff] }
  0x49   :  { %1057 = vmatmul.msk.bf16.vlgmr.msrb.gmra.mxu0 %vm359_vm0, %v1576_v1  ;;  %v1085_v1 = vor.u32 %v1297_v27, %v1084_v26  ;;  %v1133_v26 = vor.u32 %v1309_v24, %v1132_v23  ;;  %v1134_v27 = vld [vmem:[#allocation8 + $0x98] sm:$0xf0]  ;;  %v1335_v8 = vld [vmem:[#allocation10 + $0x68] sm:$0xff]  ;;  %v1332_v14 = vld [vmem:[#allocation10 + $0x50] sm:$0xff] }
  0x4a   :  { %679 = vmatpush.bf16.msra.mxu0 %v1121_v10  ;;  %427 = vmatmul.bf16.vlgmr.msrb.gmra.mxu2 %v111_v53  ;;  %v1070_v53 = vld [vmem:[#allocation8 + $0x18] sm:$0xf0]  ;;  %v1148_v10 = vld [vmem:[#allocation8 + $0xb0] sm:$0xf]  ;;  %v1330_v18 = vld [vmem:[#allocation10 + $0x40] sm:$0xff] }
  0x4b   :  { %693 = vmatpush.bf16.msra.mxu2 %v1185_v36  ;;  %v1073_v56 = vor.u32 %v1292_v51, %v1070_v53  ;;  %668 = vmatpush.bf16.msrb.mxu3 %v1157_v6  ;;  %v1129_v36 = vor.u32 %v1306_v31, %v1126_v34  ;;  %v1337_v4 = vld [vmem:[#allocation10 + $0x78] sm:$0xff]  ;;  %v1336_v6 = vld [vmem:[#allocation10 + $0x70] sm:$0xff] }
  0x4c   :  { %655 = vmatpush.bf16.msrb.mxu1 %v1085_v1  ;;  %v155_v1 = vperm.slane %v153_v22, 0  ;;  %v1333_v12 = vld [vmem:[#allocation10 + $0x58] sm:$0xff] }
  0x4e   :  { %680 = vmatpush.bf16.msra.mxu0 %v1113_v13  ;;  %v1149_v13 = vor.u32 %v1313_v11, %v1148_v10  ;;  %v1334_v10 = vld [vmem:[#allocation10 + $0x60] sm:$0xff]  ;;  %v1325_v11 = vld [vmem:[#allocation10 + $0x18] sm:$0xff] }
  0x4f   :  { %694 = vmatpush.bf16.msra.mxu2 %v1177_v48 }
  0x50   :  { %656 = vmatpush.bf16.msrb.mxu1 %v1077_v40  ;;  %669 = vmatpush.bf16.msrb.mxu3 %v1149_v13  ;;  %v1324_v13 = vld [vmem:[#allocation10 + $0x10] sm:$0xff] }
  0x52   :  { %681 = vmatpush.bf16.msra.mxu0 %v1105_v19  ;;  %v1141_v19 = vor.u32 %v1311_v17, %v1140_v16  ;;  %v1331_v16 = vld [vmem:[#allocation10 + $0x48] sm:$0xff]  ;;  %v1322_v17 = vld [vmem:[#allocation10] sm:$0xff] }
  0x53   :  { %695 = vmatpush.bf16.msra.mxu2 %v1169_v60 }
  0x54   :  { %657 = vmatpush.bf16.msrb.mxu1 %v1069_v52  ;;  %670 = vmatpush.bf16.msrb.mxu3 %v1141_v19 }
  0x56   :  { %682 = vmatpush.bf16.msra.mxu0 %v1097_v25  ;;  %v1308_v25 = vld [vmem:[#allocation8 + $0x94] sm:$0xf] }
  0x57   :  { %696 = vmatpush.bf16.msra.mxu2 %v1161_v9  ;;  %v1137_v28 = vor.u32 %v1308_v25, %v1134_v27  ;;  %v1326_v9 = vld [vmem:[#allocation10 + $0x20] sm:$0xff] }
  0x58   :  { %658 = vmatpush.bf16.msrb.mxu1 %v1061_v0  ;;  %671 = vmatpush.bf16.msrb.mxu3 %v1133_v26 }
  0x5a   :  { %683 = vmatpush.bf16.msra.mxu0 %v1089_v32 }
  0x5b   :  { %697 = vmatpush.bf16.msra.mxu2 %v1153_v15  ;;  %v1323_v15 = vld [vmem:[#allocation10 + $0x8] sm:$0xff] }
  0x5c   :  { %672 = vmatpush.bf16.msrb.mxu3 %v1125_v33  ;;  %845 = vmatpush.bf16.msra.mxu1 %v1329_v3 }
  0x5e   :  { %684 = vmatpush.bf16.msra.mxu0 %v1081_v44 }
  0x5f   :  { %698 = vmatpush.bf16.msra.mxu2 %v1145_v21  ;;  %v485_v21 = vld [vmem:[%s1598_s4] sm:$0x3] }
  0x60   :  { %859 = vmatpush.bf16.msra.mxu3 %v1337_v4  ;;  %v487_v24 = vperm.slane %v485_v21, 0  ;;  %v488_v25 = vperm.slane %v485_v21, 1 }
  0x62   :  { %685 = vmatpush.bf16.msra.mxu0 %v1073_v56 }
  0x63   :  { %699 = vmatpush.bf16.msra.mxu2 %v1137_v28 }
  0x64   :  { %860 = vmatpush.bf16.msra.mxu3 %v1336_v6 }
  0x66   :  { %686 = vmatpush.bf16.msra.mxu0 %v1065_v5  ;;  %v1328_v5 = vld [vmem:[#allocation10 + $0x30] sm:$0xff] }
  0x67   :  { %700 = vmatpush.bf16.msra.mxu2 %v1129_v36  ;;  %846 = vmatpush.bf16.msra.mxu1 %v1328_v5 }
  0x68   :  { %861 = vmatpush.bf16.msra.mxu3 %v1335_v8 }
  0x6b   :  { %847 = vmatpush.bf16.msra.mxu1 %v1327_v7 }
  0x6c   :  { %862 = vmatpush.bf16.msra.mxu3 %v1334_v10 }
  0x6f   :  { %848 = vmatpush.bf16.msra.mxu1 %v1326_v9 }
  0x70   :  { %863 = vmatpush.bf16.msra.mxu3 %v1333_v12 }
  0x73   :  { %849 = vmatpush.bf16.msra.mxu1 %v1325_v11 }
  0x74   :  { %864 = vmatpush.bf16.msra.mxu3 %v1332_v14 }
  0x77   :  { %850 = vmatpush.bf16.msra.mxu1 %v1324_v13 }
  0x78   :  { %865 = vmatpush.bf16.msra.mxu3 %v1331_v16 }
  0x7b   :  { %851 = vmatpush.bf16.msra.mxu1 %v1323_v15 }
  0x7c   :  { %866 = vmatpush.bf16.msra.mxu3 %v1330_v18 }
  0x7f   :  { %852 = vmatpush.bf16.msra.mxu1 %v1322_v17 }
  0xad   :  { %v400_v37 = vpop.f32.mrf.mxu2 }
  0xb5   :  { %v402_v45 = vpop.f32.mrf.mxu2 }
  0xb6   :  { %v372_v32 = vpop.f32.mrf.mxu0 }
  0xb7   :  { %v373_v38 = vadd.f32 %v372_v32, %v155_v1 }
  0xb8   :  { %v386_v35 = vpop.f32.mrf.mxu1 }
  0xb9   :  { %v387_v39 = vadd.f32 %v386_v35, %v373_v38 }
  0xbb   :  { %v401_v43 = vadd.f32 %v400_v37, %v387_v39 }
  0xbd   :  { %v447_v48 = vmax.f32 %v401_v43, 0.0 }
  0xbe   :  { %v374_v40 = vpop.f32.mrf.mxu0 }
  0xbf   :  { %v375_v41 = vadd.f32 %v374_v40, %v155_v1  ;;  %v414_v47 = vpop.f32.mrf.mxu3 }
  0xc0   :  { %v388_v42 = vpop.f32.mrf.mxu1  ;;  %v415_v54 = vadd.f32 %v414_v47, %v156_v50 }
  0xc1   :  { %v389_v44 = vadd.f32 %v388_v42, %v375_v41 }
  0xc3   :  { %v403_v46 = vadd.f32 %v402_v45, %v389_v44  ;;  %v1350_v44 = vld [vmem:[%s1600_s6] ss:$0 sm:$0xff] }
  0xc5   :  { %v449_v49 = vmax.f32 %v403_v46, 0.0 }
  0xc6   :  { %v442_v52 = vpop.f32.mrf.mxu0 }
  0xc7   :  { %v451_v51 = vpack.c.bf16 %v449_v49, %v447_v48  ;;  %v416_v55 = vpop.f32.mrf.mxu3 }
  0xc8   :  { %v417_v57 = vadd.f32 %v416_v55, %v156_v50 }
  0xc9   :  { %659 = vmatmul.bf16.vlgmr.msrb.gmra.mxu1 %v451_v51  ;;  %687 = vmatmul.bf16.vlgmr.msra.gmra.mxu0 %v451_v51 }
  0xcd   :  { %v428_v53 = vpop.f32.mrf.mxu2 }
  0xce   :  { %v429_v56 = vadd.f32 %v428_v53, %v415_v54  ;;  %v444_v61 = vpop.f32.mrf.mxu0 }
  0xd0   :  { %v443_v59 = vadd.f32 %v442_v52, %v429_v56 }
  0xd2   :  { %v448_v63 = vmax.f32 %v443_v59, 0.0 }
  0xd5   :  { %v430_v58 = vpop.f32.mrf.mxu2 }
  0xd6   :  { %v431_v60 = vadd.f32 %v430_v58, %v417_v57 }
  0xd8   :  { %v445_v62 = vadd.f32 %v444_v61, %v431_v60 }
  0xda   :  { %v450_v0 = vmax.f32 %v445_v62, 0.0 }
  0xdc   :  { %v452_v2 = vpack.c.bf16 %v450_v0, %v448_v63 }
  0xde   :  { %673 = vmatmul.bf16.vlgmr.msrb.gmra.mxu3 %v452_v2  ;;  %701 = vmatmul.bf16.vlgmr.msra.gmra.mxu2 %v452_v2 }
 0x146   :  { %v660_v19 = vpop.f32.mrf.mxu1  ;;  %v688_v20 = vpop.f32.mrf.mxu0 }
 0x147   :  { %v661_v28 = vadd.f32 %v660_v19, %v487_v24  ;;  %v689_v1 = vadd.f32 %v688_v20, %v488_v25 }
 0x14e   :  { %v662_v26 = vpop.f32.mrf.mxu1  ;;  %v690_v27 = vpop.f32.mrf.mxu0 }
 0x14f   :  { %v663_v29 = vadd.f32 %v662_v26, %v487_v24  ;;  %v691_v30 = vadd.f32 %v690_v27, %v488_v25 }
 0x161   :  { %v674_v22 = vpop.f32.mrf.mxu3  ;;  %v702_v23 = vpop.f32.mrf.mxu2 }
 0x162   :  { %v675_v31 = vadd.f32 %v674_v22, %v661_v28  ;;  %v703_v32 = vadd.f32 %v702_v23, %v689_v1 }
 0x164   :  { %v707_v37 = vmax.f32 %v675_v31, 0.0  ;;  %v708_v38 = vmax.f32 %v703_v32, 0.0 }
 0x169   :  { %v676_v33 = vpop.f32.mrf.mxu3  ;;  %v704_v34 = vpop.f32.mrf.mxu2 }
 0x16a   :  { %v677_v35 = vadd.f32 %v676_v33, %v663_v29  ;;  %v705_v36 = vadd.f32 %v704_v34, %v691_v30 }
 0x16c   :  { %v709_v39 = vmax.f32 %v677_v35, 0.0  ;;  %v710_v40 = vmax.f32 %v705_v36, 0.0 }
 0x16e   :  { %v711_v41 = vpack.c.bf16 %v709_v39, %v707_v37  ;;  %v712_v42 = vpack.c.bf16 %v710_v40, %v708_v38 }
 0x170   :  { %853 = vmatmul.bf16.vlgmr.msra.gmra.mxu1 %v711_v41  ;;  %867 = vmatmul.bf16.vlgmr.msra.gmra.mxu3 %v712_v42 }
 0x1ed   :  { %v854_v43 = vpop.f32.mrf.mxu1 }
 0x1ee   :  { %v855_v45 = vadd.f32 %v1350_v44, %v854_v43 }
 0x1f3   :  { %v868_v46 = vpop.f32.mrf.mxu3 }
 0x1f4   :  { %v869_v47 = vadd.f32 %v868_v46, %v855_v45 }
 0x1f5   :  { %v856_v48 = vpop.f32.mrf.mxu1 }
 0x1f6   :  { %873 = vst [vmem:[#allocation11] sm:$0xff] %v869_v47  ;;  %v857_v49 = vadd.f32 %v1350_v44, %v856_v48 }
 0x1fb   :  { %v870_v50 = vpop.f32.mrf.mxu3 }
 0x1fc   :  { %v871_v51 = vadd.f32 %v870_v50, %v857_v49 }
 0x1fe   :  { %874 = vst [vmem:[#allocation11 + $0x8] sm:$0xff] %v871_v51 }
 0x1ff   :  { %887 = dma.vmem_to_hbm [thread:$0]  %s880_s8, 256, %s882_s13, [#allocation4], %s1504_s9, %s1504_s9, %s1505_s10  }
 0x200   :  { %1501 = dma.done.wait [#allocation4], 256  }
 0x201   :  { %1502 = vsyncadd [#allocation4], 4294967040 }
 0x202   :  { %892 = vsyncpa [#allocation3], 1 }
 0x203   :  { %893 = vsyncpa [#allocation6], 1 }
 0x204   :  { %894 = vsyncpa [#allocation9], 1 }
 0x205   :  { %895 = vsyncpa [#allocation4], 1 }

</bundles_post_ra>
